<compile_context>
chip_gen: v6e
topology: v6e:2x2x1
jax: 0.10.0
libtpu: 0.0.40
codegen_flags: <defaults>
</compile_context>

<pallas_src>
import functools
import math

import jax
import jax.numpy as jnp
from jax.experimental import pallas as pl
from jax.experimental.pallas import tpu as pltpu


# ----------------------------------------------------------------------------
# VMEM budget / tile-size helpers
# ----------------------------------------------------------------------------
@functools.lru_cache(maxsize=None)
def _vmem_limit_bytes():
    """Scoped-VMEM limit derived from the chip, with double-buffer headroom."""
    try:
        cap = int(pltpu.get_tpu_info().vmem_capacity_bytes)
    except Exception:
        cap = 64 * 1024 * 1024
    return max(32 * 1024 * 1024, int(cap * 3 // 4))


def _pick_tile(total, mult, target):
    """Largest t <= target with t % mult == 0 and total % t == 0 (else full)."""
    t = (min(target, total) // mult) * mult
    while t >= mult:
        if total % t == 0:
            return t
        t -= mult
    return total  # full-extent block is always a legal BlockSpec


def _target_rows(cin, cout):
    """Row-tile target sized against VMEM (streamed x + y tiles, ~1/4 budget)."""
    per_row = 4 * (cin + cout) * 2
    rows = (_vmem_limit_bytes() // 4) // max(per_row, 1)
    return int(max(16, min(4096, rows)))


# ----------------------------------------------------------------------------
# Pairwise (negative squared) distance, tiled over query rows
# ----------------------------------------------------------------------------
def pairwise_distance(x_cl):
    """x_cl: [bs, n, C] -> [bs, n, n].  f32 end-to-end (stable top_k order)."""
    bs, n, c = x_cl.shape
    x_cl = x_cl.astype(jnp.float32)
    tq_target = max(8, min(1024, (_vmem_limit_bytes() // 8) // max(4 * n, 1)))
    tq = _pick_tile(n, 8, tq_target)
    grid = (bs, n // tq)

    def kernel(q_ref, k_ref, o_ref):
        xq = q_ref[0]                                              # [tq, C]
        xk = k_ref[0]                                              # [n, C]
        qq = jnp.sum(xq * xq, axis=1, keepdims=True)               # [tq, 1]
        kk = jnp.sum(xk * xk, axis=1, keepdims=True)               # [n, 1]
        inner = jnp.dot(xq, xk.T, preferred_element_type=jnp.float32)
        o_ref[0] = 2.0 * inner - qq - kk.T

    return pl.pallas_call(
        kernel,
        out_shape=jax.ShapeDtypeStruct((bs, n, n), jnp.float32),
        grid=grid,
        in_specs=[pl.BlockSpec((1, tq, c), lambda b, i: (b, i, 0)),
                  pl.BlockSpec((1, n, c), lambda b, i: (b, 0, 0))],
        out_specs=pl.BlockSpec((1, tq, n), lambda b, i: (b, i, 0)),
        compiler_params=pltpu.CompilerParams(
            dimension_semantics=("parallel", "parallel"),
            vmem_limit_bytes=_vmem_limit_bytes()),
    )(x_cl, x_cl)


# ----------------------------------------------------------------------------
# Tiled, two-pass  (1x1 conv -> BatchNorm(batch stats) -> LeakyReLU)
# with optional fused max over the k-neighbour axis.
# ----------------------------------------------------------------------------
def linear_bn_act(x, w, b, g, beta, *, k_pool=None):
    """x: [M, Cin] (f32/bf16) -> [M, Cout] f32, or [M // k_pool, Cout] if
    k_pool is given (rows of the same neighbour group must be contiguous)."""
    m, cin = x.shape
    cout = w.shape[1]
    w_bf = w.astype(jnp.bfloat16)                       # bf16 weights for MXU
    vmem_limit = _vmem_limit_bytes()

    if k_pool is None:
        tm = _pick_tile(m, 16, _target_rows(cin, cout))
    else:
        assert m % k_pool == 0
        groups = m // k_pool
        tg = _pick_tile(groups, 16, max(16, _target_rows(cin, cout) // k_pool))
        tm = tg * k_pool
    n_tiles = m // tm

    # ---- pass 1: matmul + bias, accumulate global per-channel stats --------
    def mm_stats_kernel(x_ref, w_ref, b_ref, y_ref, s_ref, ss_ref):
        @pl.when(pl.program_id(0) == 0)
        def _init():
            s_ref[...] = jnp.zeros_like(s_ref)
            ss_ref[...] = jnp.zeros_like(ss_ref)

        y = jnp.dot(x_ref[...].astype(jnp.bfloat16), w_ref[...],
                    preferred_element_type=jnp.float32) + b_ref[...]
        y_ref[...] = y
        s_ref[...] += jnp.sum(y, axis=0, keepdims=True)
        ss_ref[...] += jnp.sum(y * y, axis=0, keepdims=True)

    x_spec = pl.BlockSpec((tm, cin), lambda i: (i, 0))
    if n_tiles >= 3:
        # memory-bound at these channel widths: deepen the activation pipeline
        x_spec = pl.BlockSpec((tm, cin), lambda i: (i, 0),
                              pipeline_mode=pl.Buffered(3))

    y, ssum, ssq = pl.pallas_call(
        mm_stats_kernel,
        out_shape=(jax.ShapeDtypeStruct((m, cout), jnp.float32),
                   jax.ShapeDtypeStruct((1, cout), jnp.float32),
                   jax.ShapeDtypeStruct((1, cout), jnp.float32)),
        grid=(n_tiles,),
        in_specs=[x_spec,
                  pl.BlockSpec((cin, cout), lambda i: (0, 0)),   # resident W
                  pl.BlockSpec((1, cout), lambda i: (0, 0))],    # resident b
        out_specs=(pl.BlockSpec((tm, cout), lambda i: (i, 0)),
                   pl.BlockSpec((1, cout), lambda i: (0, 0)),    # sum acc
                   pl.BlockSpec((1, cout), lambda i: (0, 0))),   # sumsq acc
        compiler_params=pltpu.CompilerParams(
            dimension_semantics=("arbitrary",),
            vmem_limit_bytes=vmem_limit),
    )(x, w_bf, b)

    inv_m = 1.0 / float(m)

    # ---- pass 2: normalise + LeakyReLU (+ fused k-max) ----------------------
    if k_pool is None:
        def bn_act_kernel(y_ref, s_ref, ss_ref, g_ref, be_ref, o_ref):
            mean = s_ref[...] * inv_m
            var = jnp.maximum(ss_ref[...] * inv_m - mean * mean, 0.0)
            yn = (y_ref[...] - mean) * jax.lax.rsqrt(var + 1e-5)
            yn = yn * g_ref[...] + be_ref[...]
            o_ref[...] = jnp.where(yn >= 0.0, yn, 0.2 * yn)

        return pl.pallas_call(
            bn_act_kernel,
            out_shape=jax.ShapeDtypeStruct((m, cout), jnp.float32),
            grid=(n_tiles,),
            in_specs=[pl.BlockSpec((tm, cout), lambda i: (i, 0)),
                      pl.BlockSpec((1, cout), lambda i: (0, 0)),
                      pl.BlockSpec((1, cout), lambda i: (0, 0)),
                      pl.BlockSpec((1, cout), lambda i: (0, 0)),
                      pl.BlockSpec((1, cout), lambda i: (0, 0))],
            out_specs=pl.BlockSpec((tm, cout), lambda i: (i, 0)),
            compiler_params=pltpu.CompilerParams(
                dimension_semantics=("parallel",),
                vmem_limit_bytes=vmem_limit),
        )(y, ssum, ssq, g, beta)

    groups = m // k_pool
    tg = tm // k_pool
    y3 = y.reshape(groups, k_pool, cout)       # free reshape (contiguous HBM)

    def bn_act_maxk_kernel(y_ref, s_ref, ss_ref, g_ref, be_ref, o_ref):
        mean = s_ref[...] * inv_m
        var = jnp.maximum(ss_ref[...] * inv_m - mean * mean, 0.0)
        yn = (y_ref[...] - mean) * jax.lax.rsqrt(var + 1e-5)   # [tg, k, Cout]
        yn = yn * g_ref[...] + be_ref[...]
        a = jnp.where(yn >= 0.0, yn, 0.2 * yn)
        o_ref[...] = jnp.max(a, axis=1)                        # fused k-max

    return pl.pallas_call(
        bn_act_maxk_kernel,
        out_shape=jax.ShapeDtypeStruct((groups, cout), jnp.float32),
        grid=(n_tiles,),
        in_specs=[pl.BlockSpec((tg, k_pool, cout), lambda i: (i, 0, 0)),
                  pl.BlockSpec((1, cout), lambda i: (0, 0)),
                  pl.BlockSpec((1, cout), lambda i: (0, 0)),
                  pl.BlockSpec((1, cout), lambda i: (0, 0)),
                  pl.BlockSpec((1, cout), lambda i: (0, 0))],
        out_specs=pl.BlockSpec((tg, cout), lambda i: (i, 0)),
        compiler_params=pltpu.CompilerParams(
            dimension_semantics=("parallel",),
            vmem_limit_bytes=vmem_limit),
    )(y3, ssum, ssq, g, beta)


# ----------------------------------------------------------------------------
# DenseToSparse masked max-pool (per-batch kernel)
# ----------------------------------------------------------------------------
def dense_to_sparse_pool(dense_fea, stroke_mask):
    """dense_fea: [bs, C, n_stk, n_stk_pnt], stroke_mask: [bs, 1, n_stk]."""
    bs, c, n_stk, n_stk_pnt = dense_fea.shape

    def kernel(dn_ref, m_ref, o_ref):
        pooled = jnp.max(dn_ref[0], axis=-1)          # [C, n_stk]
        keep = m_ref[0] > 0.0                         # [1, n_stk]
        o_ref[0] = jnp.where(keep, pooled, 0.0)

    return pl.pallas_call(
        kernel,
        out_shape=jax.ShapeDtypeStruct((bs, c, n_stk), jnp.float32),
        grid=(bs,),
        in_specs=[pl.BlockSpec((1, c, n_stk, n_stk_pnt), lambda b: (b, 0, 0, 0)),
                  pl.BlockSpec((1, 1, n_stk), lambda b: (b, 0, 0))],
        out_specs=pl.BlockSpec((1, c, n_stk), lambda b: (b, 0, 0)),
        compiler_params=pltpu.CompilerParams(
            dimension_semantics=("parallel",),
            vmem_limit_bytes=_vmem_limit_bytes()),
    )(dense_fea.astype(jnp.float32), stroke_mask.astype(jnp.float32))


# ----------------------------------------------------------------------------
# DGCNN pieces (hot paths in Pallas, gather/topk glue in XLA)
# ----------------------------------------------------------------------------
def get_graph_feature(x_cl, k):
    """x_cl: [bs, n, C] -> edge features [bs, n, k, 2C] (channel-last)."""
    pd = pairwise_distance(x_cl)                      # Pallas, f32
    # TODO(synk): top_k and the k-neighbour gather stay in XLA; fusing the
    # gather + concat into the first edge-conv layer via PrefetchScalarGridSpec
    # (idx table in SMEM) is the remaining review item.
    _, idx = jax.lax.top_k(pd, k)                     # [bs, n, k]
    nbr = jax.vmap(lambda xb, ib: xb[ib, :])(x_cl, idx)
    center = jnp.broadcast_to(x_cl[:, :, None, :], nbr.shape)
    return jnp.concatenate([nbr - center, center], axis=-1)


def apply_mlp(x_flat, layers, k_pool=None):
    """Sequence of (W, b, gamma, beta) point-wise layers on [M, Cin]; the
    k-neighbour max-pool (if any) is fused into the last layer."""
    for li, (w, b, g, be) in enumerate(layers):
        pool = k_pool if li == len(layers) - 1 else None
        x_flat = linear_bn_act(x_flat, w, b, g, be, k_pool=pool)
    return x_flat


def gcn_encoder_forward(x_ncl, gcn_params, n_near):
    """x_ncl: [bs, emb_in, n] (PyTorch layout) -> [bs, emb_out, n]."""
    bs, _, n = x_ncl.shape
    k = n_near
    x_cl = jnp.transpose(x_ncl, (0, 2, 1)).astype(jnp.float32)   # [bs, n, Cin]

    # --- edge-conv block 1 (bf16 edge features, k-max fused into last layer)
    feat = get_graph_feature(x_cl, k).astype(jnp.bfloat16)       # [bs,n,k,2C]
    x1 = apply_mlp(feat.reshape(bs * n * k, feat.shape[-1]),
                   gcn_params["conv1"], k_pool=k)                # [bs*n, C1]
    x1_cl = x1.reshape(bs, n, -1)

    # --- edge-conv block 2 ---
    feat = get_graph_feature(x1_cl, k).astype(jnp.bfloat16)      # [bs,n,k,2C1]
    x2 = apply_mlp(feat.reshape(bs * n * k, feat.shape[-1]),
                   gcn_params["conv2"], k_pool=k)                # [bs*n, C2]
    x2_cl = x2.reshape(bs, n, -1)

    # --- fuse + 1d MLP ---
    cat = jnp.concatenate([x1_cl, x2_cl], axis=-1).reshape(bs * n, -1)
    out = apply_mlp(cat, gcn_params["conv3"])
    out = out.reshape(bs, n, -1)
    return jnp.transpose(out, (0, 2, 1))                         # [bs, emb_out, n]


# ----------------------------------------------------------------------------
# DownSample: Conv2d(1,3)/stride(1,2)/pad(0,1) + BN + LeakyReLU  (im2col +
# the same tiled two-pass Pallas conv/BN/act kernel).  Dropout2d is a no-op.
# ----------------------------------------------------------------------------
def down_sample(x_ncl, conv_params, n_stk, n_stk_pnt):
    w_flat, b, g, be = conv_params
    bs, c, npnt = x_ncl.shape
    assert npnt == n_stk * n_stk_pnt
    t_out = n_stk_pnt // 2
    x = x_ncl.reshape(bs, c, n_stk, n_stk_pnt)
    x_cl = jnp.transpose(x, (0, 2, 3, 1))                        # [bs,stk,W,C]
    x_pad = jnp.pad(x_cl, ((0, 0), (0, 0), (1, 1), (0, 0)))
    cols = [x_pad[:, :, d::2, :][:, :, :t_out, :] for d in range(3)]
    xcol = jnp.concatenate(cols, axis=-1)                        # [bs,stk,T,3C]
    h = linear_bn_act(xcol.reshape(bs * n_stk * t_out, 3 * c), w_flat, b, g, be)
    out = h.reshape(bs, n_stk, t_out, -1)
    return jnp.transpose(out, (0, 3, 1, 2)).reshape(bs, -1, n_stk * t_out)


# ----------------------------------------------------------------------------
# SDGraphEncoder forward (sample_type='down_sample', with_time=False)
# ----------------------------------------------------------------------------
def sdgraph_encoder_forward(sparse_fea, dense_fea, mask, params, *,
                            n_stk, n_stk_pnt, sp_near, dn_near):
    bs, sp_in, _ = sparse_fea.shape
    dn_in = dense_fea.shape[1]

    # DenseToSparse: masked stroke-level max-pool + concat (sparse first)
    stroke_mask = jnp.transpose(jnp.max(mask, axis=-1, keepdims=True), (0, 2, 1))
    pooled = dense_to_sparse_pool(dense_fea, stroke_mask)        # [bs,dn_in,stk]
    union_sparse = jnp.concatenate([sparse_fea, pooled], axis=1)

    # SparseToDense: broadcast sparse features to every point (dense first)
    dn_flat = dense_fea.reshape(bs, dn_in, n_stk * n_stk_pnt)
    sp_rep = jnp.repeat(sparse_fea[:, :, :, None], n_stk_pnt, axis=-1)
    sp_rep = sp_rep.reshape(bs, sp_in, n_stk * n_stk_pnt)
    union_dense = jnp.concatenate([dn_flat, sp_rep], axis=1)

    # DGCNN updates (Pallas)
    union_sparse = gcn_encoder_forward(union_sparse, params["sparse_update"], sp_near)
    union_dense = gcn_encoder_forward(union_dense, params["dense_update"], dn_near)

    # DownSample on the dense branch
    union_dense = down_sample(union_dense, params["sample"], n_stk, n_stk_pnt)
    return union_sparse, union_dense


# ----------------------------------------------------------------------------
# Deterministic parameter construction (Conv default-style uniform init)
# ----------------------------------------------------------------------------
def make_linear_params(key, cin, cout):
    key, k1, k2 = jax.random.split(key, 3)
    bound = 1.0 / math.sqrt(cin)
    w = jax.random.uniform(k1, (cin, cout), jnp.float32, -bound, bound)
    b = jax.random.uniform(k2, (1, cout), jnp.float32, -bound, bound)
    gamma = jnp.ones((1, cout), jnp.float32)
    beta = jnp.zeros((1, cout), jnp.float32)
    return key, (w, b, gamma, beta)


def make_mlp_params(key, channels):
    layers = []
    for cin, cout in zip(channels[:-1], channels[1:]):
        key, p = make_linear_params(key, cin, cout)
        layers.append(p)
    return key, layers


def make_gcn_params(key, emb_in, emb_out):
    emb_inc = (emb_out / (4 * emb_in)) ** 0.25
    emb_l1_0 = emb_in * 2
    emb_l1_1 = int(emb_l1_0 * emb_inc)
    emb_l1_2 = int(emb_l1_0 * emb_inc ** 2)
    emb_l2_0 = emb_l1_2 * 2
    emb_l2_1 = int(emb_l2_0 * emb_inc)
    emb_l2_2 = emb_out
    emb_l3_0 = emb_l2_2 + emb_l1_2
    emb_l3_1 = int((emb_out / emb_l3_0) ** 0.5 * emb_l3_0)
    emb_l3_2 = emb_out

    params = {}
    key, params["conv1"] = make_mlp_params(key, [emb_l1_0, emb_l1_1, emb_l1_2])
    key, params["conv2"] = make_mlp_params(key, [emb_l2_0, emb_l2_1, emb_l2_2])
    key, params["conv3"] = make_mlp_params(key, [emb_l3_0, emb_l3_1, emb_l3_2])
    return key, params


def make_sdgraph_params(key, sparse_in, sparse_out, dense_in, dense_out):
    params = {}
    key, params["sparse_update"] = make_gcn_params(key, sparse_in + dense_in, sparse_out)
    key, params["dense_update"] = make_gcn_params(key, dense_in + sparse_in, dense_out)
    # DownSample: Conv2d(dense_out->dense_out, kernel (1,3)) expressed as a
    # [3*dense_out, dense_out] matmul over im2col columns (row d*C + ci).
    key, params["sample"] = make_linear_params(key, 3 * dense_out, dense_out)
    return params


# ----------------------------------------------------------------------------
if __name__ == "__main__":
    bs = 2
    sparse_in, dense_in = 4, 4
    sparse_out, dense_out = 32, 32
    n_stk, n_stk_pnt = 8, 16
    sp_near, dn_near = 4, 4

    key = jax.random.PRNGKey(0)
    key, k1, k2 = jax.random.split(key, 3)
    sparse_fea = jax.random.normal(k1, (bs, sparse_in, n_stk), jnp.float32)
    dense_fea = jax.random.normal(k2, (bs, dense_in, n_stk, n_stk_pnt), jnp.float32)
    mask = jnp.ones((bs, n_stk, n_stk_pnt), jnp.float32).at[:, -1, :].set(0.0)

    params = make_sdgraph_params(jax.random.PRNGKey(0),
                                 sparse_in, sparse_out, dense_in, dense_out)

    us, ud = sdgraph_encoder_forward(sparse_fea, dense_fea, mask, params,
                                     n_stk=n_stk, n_stk_pnt=n_stk_pnt,
                                     sp_near=sp_near, dn_near=dn_near)
    us, ud = jax.block_until_ready((us, ud))

    assert us.shape == (bs, sparse_out, n_stk), us.shape
    assert ud.shape == (bs, dense_out, n_stk * n_stk_pnt // 2), ud.shape
    assert bool(jnp.all(jnp.isfinite(us))) and bool(jnp.all(jnp.isfinite(ud)))
    print("KERNEL_OK")
</pallas_src>

<mosaic_0001>
module attributes {stable_mosaic.version = 11 : i64} {
  func.func @kernel(%arg0: i32, %arg1: memref<1x4x8x16xf32, #tpu.memory_space<vmem>>, %arg2: memref<1x1x8xf32, #tpu.memory_space<vmem>>, %arg3: memref<1x4x8xf32, #tpu.memory_space<vmem>>) attributes {dimension_semantics = [#tpu.dimension_semantics<parallel>], iteration_bounds = array<i64: 2>, scalar_prefetch = 0 : i64, scratch_operands = 0 : i64, tpu.core_type = #tpu.core_type<tc>, window_params = [{transform_indices = @transform_0, window_bounds = array<i64: 1, 4, 8, 16>}, {transform_indices = @transform_1, window_bounds = array<i64: 1, 1, 8>}, {transform_indices = @transform_2, window_bounds = array<i64: 1, 4, 8>}]} {
    %c0 = arith.constant 0 : index
    %c0_0 = arith.constant 0 : index
    %c0_1 = arith.constant 0 : index
    %c0_2 = arith.constant 0 : index
    %0 = vector.load %arg1[%c0, %c0_0, %c0_1, %c0_2] : memref<1x4x8x16xf32, #tpu.memory_space<vmem>>, vector<1x4x8x16xf32>
    %1 = vector.shape_cast %0 : vector<1x4x8x16xf32> to vector<4x8x16xf32>
    %cst = arith.constant dense<0xFF800000> : vector<4x8xf32>
    %2 = vector.multi_reduction <maximumf>, %1, %cst [2] : vector<4x8x16xf32> to vector<4x8xf32>
    %c0_3 = arith.constant 0 : index
    %c0_4 = arith.constant 0 : index
    %c0_5 = arith.constant 0 : index
    %3 = vector.load %arg2[%c0_3, %c0_4, %c0_5] : memref<1x1x8xf32, #tpu.memory_space<vmem>>, vector<1x1x8xf32>
    %4 = vector.shape_cast %3 : vector<1x1x8xf32> to vector<1x8xf32>
    %cst_6 = arith.constant 0.000000e+00 : f32
    %5 = vector.broadcast %cst_6 : f32 to vector<1x8xf32>
    %6 = arith.cmpf ogt, %4, %5 : vector<1x8xf32>
    %cst_7 = arith.constant 0.000000e+00 : f32
    %7 = vector.shape_cast %6 : vector<1x8xi1> to vector<1x8xi1>
    %8 = vector.broadcast %7 : vector<1x8xi1> to vector<4x8xi1>
    %9 = vector.broadcast %cst_7 : f32 to vector<4x8xf32>
    %10 = arith.select %8, %2, %9 : vector<4x8xi1>, vector<4x8xf32>
    %c0_8 = arith.constant 0 : index
    %c0_9 = arith.constant 0 : index
    %c0_10 = arith.constant 0 : index
    %11 = vector.load %arg3[%c0_8, %c0_9, %c0_10] : memref<1x4x8xf32, #tpu.memory_space<vmem>>, vector<1x4x8xf32>
    %12 = vector.shape_cast %11 : vector<1x4x8xf32> to vector<4x8xf32>
    %13 = vector.shape_cast %10 : vector<4x8xf32> to vector<1x4x8xf32>
    tpu.vector_store %arg3[%c0_8, %c0_9, %c0_10], %13 {strides = array<i32>} : memref<1x4x8xf32, #tpu.memory_space<vmem>>, vector<1x4x8xf32>,
    return
  }
  func.func @transform_0(%arg0: i32) -> (i32, i32, i32, i32) {
    %c0_i32 = arith.constant 0 : i32
    %c0_i32_0 = arith.constant 0 : i32
    %c0_i32_1 = arith.constant 0 : i32
    %c0_i32_2 = arith.constant 0 : i32
    return %arg0, %c0_i32, %c0_i32_0, %c0_i32_1 : i32, i32, i32, i32
  }
  func.func @transform_1(%arg0: i32) -> (i32, i32, i32) {
    %c0_i32 = arith.constant 0 : i32
    %c0_i32_0 = arith.constant 0 : i32
    %c0_i32_1 = arith.constant 0 : i32
    return %arg0, %c0_i32, %c0_i32_0 : i32, i32, i32
  }
  func.func @transform_2(%arg0: i32) -> (i32, i32, i32) {
    %c0_i32 = arith.constant 0 : i32
    %c0_i32_0 = arith.constant 0 : i32
    %c0_i32_1 = arith.constant 0 : i32
    return %arg0, %c0_i32, %c0_i32_0 : i32, i32, i32
  }
}

</mosaic_0001>

<bundles_post_ra>
// kernel: tpu_custom_call.1
= control target key start
LH: loop header
LB: loop body
LE: loop exit
PB: predicated region body
PF: predicated region fallthrough
CT: control target
= control target key end

     0   :  { %7 = vsyncpa [#allocation3], 0  ;;  %s767_s0 = inlined_call_operand.hbm [shape: f32[2,4,8,16], index: 0, kind: input, shape index: {}]   ;;  %s768_s1 = inlined_call_operand.hbm [shape: f32[2,1,8], index: 1, kind: input, shape index: {}]   ;;  %s769_s2 = inlined_call_operand.hbm [shape: f32[2,4,8], index: 2, kind: output, shape index: {}]  }
   0x1   :  { %9 = vsyncpa [#allocation3 + $0x1], 0 }
   0x2   :  { %10 = vsyncpa [#allocation6], 0 }
   0x3   :  { %12 = vsyncpa [#allocation6 + $0x1], 0 }
   0x4   :  { %13 = vsyncpa [#allocation4], 0 }
   0x5   :  { %15 = vsyncpa [#allocation4 + $0x1], 0  ;;  %s573_s9 = smov 0   ;;  %s575_s10 = smov 0  }
   0x6   :  { %s577_s11 = smov 0   ;;  %s579_s12 = smov 0  }
   0x7 LB: > { %s594_s13 = sadd.s32 4294967295, %s550_s12   ;;  %s357_s14 = sadd.s32 4294967294, %s550_s12   ;;  %s550_s12 = sphi %s579_s12, %s786_s12   ;;  %s546_s11 = sphi %s577_s11, %s785_s11   ;;  %s542_s10 = sphi %s575_s10, %s784_s10   ;;  %s538_s9 = sphi %s573_s9, %s783_s9  }
   0x8   : > { %s598_s15 = sadd.s32 1, %s550_s12   ;;  %s28_s16 = sadd.s32 1, %s546_s11 }
   0x9   : > { %s25_s17 = ssub.s32 %s550_s12, %s598_s15  ;;  %p35_p0 = scmp.ne.s32.totalorder %s546_s11, %s542_s10 }
   0xa   : > { %p26_p1 = scmp.eq.s32.totalorder %s25_s17, 0  ;;  %p36_p2 = scmp.eq.s32.totalorder %s550_s12, 0 }
   0xb   : > { %p41_p3 = scmp.ne.s32.totalorder %s542_s10, %s538_s9  ;;  %p42_p4 = scmp.eq.s32.totalorder %s594_s13, 0 }
   0xc   : > { %s610_s18 = scalar_select %p26_p1, %s546_s11, %s28_s16  }
   0xd   : > { %p612_p5 = por %p36_p2, %p35_p0  ;;  %p616_p6 = por %p42_p4, %p41_p3 }
   0xe   : > { %p91_p7 = scmp.eq.s32.totalorder %s594_s13, 1  ;;  %p97_p8 = scmp.eq.s32.totalorder %s357_s14, 1 }
   0xf   : > { %s773_s20 = scalar_select %p616_p6, 1, 0 }
  0x10   : > { %p389_p10 = scmp.lt.s32.totalorder %s550_s12, 2  ;;  %p623_p11 = por %p91_p7, %p35_p0 }
  0x11   : > { %p627_p12 = por %p97_p8, %p41_p3  ;;  %s632_s23 = sand.u32 1, %s546_s11  }
  0x12   : > { %s774_s21 = scalar_select %p623_p11, 1, 0 }
  0x13   : > { %s775_s22 = scalar_select %p627_p12, 1, 0 }
  0x14   : > { %s371_s24 = sshll.u32 %s550_s12, 9  ;;  %s360_s25 = sshll.u32 %s632_s23, 5 }
  0x15   : > { %s639_s28 = scalar_lea.hbm %s767_s0, %s371_s24  ;;  %s121_s29 = scalar_lea.vmem [#allocation2], %s360_s25 }
  0x16   : > { %s128_s30 = sshll.u32 %s121_s29, 4  ;;  %p643_p13 = pnand %p389_p10, %p612_p5  ;;  %s647_s30 = int_to_ptr.vmem [resolvable:$true] %s128_s30 }
  0x17   : > { %s118_s4 = scalar_lea.sflag [#allocation3], %s632_s23  ;;  %s426_s5 = scalar_lea.hbm %s639_s28, 512 }
  0x18   : > { %p427_p0 = scmp.ne.s32.totalorder %s639_s28, %s426_s5  ;;  %p428_p1 = pneg %p643_p13 }
  0x19   : > { %s431_s8 = scalar_lea.hbm %s767_s0, 1024  ;;  %p432_p4 = scmp.lt.s32.totalorder %s639_s28, %s767_s0 }
  0x1a   : > { %p429_p2 = pnand %p428_p1, %p427_p0  ;;  %p433_p5 = scmp.lt.s32.totalorder %s431_s8, %s426_s5 }
  0x1c   : > { %p430_p3 = pneg %p429_p2  ;;  %p434_p7 = por %p433_p5, %p432_p4 }
  0x1e   : > { %p435_p8 = pnand %p434_p7, %p430_p3 }
  0x20   : > { %438 = shalt.err (!%p435_p8)
}
  0x21   : > { %s439_s17 = scalar_lea.vmem %s647_s30, 512  ;;  %s552_s19 = smov [#allocation2]  }
  0x22   : > { %p440_p10 = scmp.ne.s32.totalorder %s647_s30, %s439_s17  ;;  %s444_s24 = sshll.u32 %s552_s19, 4  ;;  %s445_s24 = int_to_ptr.vmem [resolvable:$false] %s444_s24 }
  0x23   : > { %s446_s25 = scalar_lea.vmem %s445_s24, 1024  ;;  %p447_p9 = scmp.lt.s32.totalorder %s647_s30, %s445_s24 }
  0x24   : > { %p442_p0 = pnand %p440_p10, %p428_p1  ;;  %p448_p12 = scmp.lt.s32.totalorder %s446_s25, %s439_s17 }
  0x26   : > { %p443_p2 = pneg %p442_p0  ;;  %p449_p11 = por %p448_p12, %p447_p9 }
  0x28   : > { %p450_p4 = pnand %p449_p11, %p443_p2 }
  0x2a   : > { %453 = shalt.err (!%p450_p4)
}
  0x2b   : > { %s553_s26 = smov 128   ;;  %s554_s27 = smov 8  }
  0x2c   : > { %381 = dma.hbm_to_vmem [thread:$0]  (!%p643_p13), %s639_s28, 512, %s647_s30, %s118_s4, %s553_s26, %s553_s26, %s554_s27  }
  0x2d   : > { %p364_p3 = scmp.ge.s32.totalorder %s550_s12, 1  ;;  %p153_p5 = scmp.lt.s32.totalorder %s550_s12, 3 }
  0x2e   : > { %s363_s5 = sshll.u32 %s550_s12, 4  ;;  %s141_s14 = scalar_lea.vmem [#allocation5], %s632_s23 }
  0x2f   : > { %p678_p9 = pnand %p364_p3, %p153_p5  ;;  %s686_s8 = scalar_lea.hbm %s768_s1, %s363_s5 }
  0x30   : > { %s148_s16 = sshll.u32 %s141_s14, 4  ;;  %s139_s17 = scalar_lea.sflag [#allocation6], %s632_s23  ;;  %s149_s16 = int_to_ptr.vmem [resolvable:$true] %s148_s16 }
  0x31   : > { %s777_s29 = scalar_select %p678_p9, 1, 0 }
  0x32   : > { %s454_s28 = scalar_lea.hbm %s686_s8, 16  ;;  %s459_s19 = scalar_lea.hbm %s768_s1, 32 }
  0x33   : > { %p455_p11 = scmp.ne.s32.totalorder %s686_s8, %s454_s28  ;;  %p460_p8 = scmp.lt.s32.totalorder %s686_s8, %s768_s1 }
  0x34   : > { %p461_p10 = scmp.lt.s32.totalorder %s459_s19, %s454_s28 }
  0x35   : > { %p457_p12 = pnand %p455_p11, %p428_p1 }
  0x36   : > { %p462_p0 = por %p461_p10, %p460_p8 }
  0x37   : > { %p458_p7 = pneg %p457_p12 }
  0x39   : > { %p463_p2 = pnand %p462_p0, %p458_p7 }
  0x3b   : > { %466 = shalt.err (!%p463_p2)
}
  0x3c   : > { %s467_s26 = scalar_lea.vmem %s149_s16, 16  ;;  %s555_s23 = smov [#allocation5]  }
  0x3d   : > { %p468_p4 = scmp.ne.s32.totalorder %s149_s16, %s467_s26  ;;  %s472_s27 = sshll.u32 %s555_s23, 4  ;;  %s473_s27 = int_to_ptr.vmem [resolvable:$false] %s472_s27 }
  0x3e   : > { %s474_s5 = scalar_lea.vmem %s473_s27, 32  ;;  %p475_p11 = scmp.lt.s32.totalorder %s149_s16, %s473_s27 }
  0x3f   : > { %p470_p3 = pnand %p468_p4, %p428_p1  ;;  %p476_p12 = scmp.lt.s32.totalorder %s474_s5, %s467_s26 }
  0x41   : > { %p471_p5 = pneg %p470_p3  ;;  %p477_p6 = por %p476_p12, %p475_p11 }
  0x43   : > { %p478_p9 = pnand %p477_p6, %p471_p5 }
  0x45   : > { %481 = shalt.err (!%p478_p9)
}
  0x46   : > { %384 = dma.hbm_to_vmem [thread:$0]  (!%p643_p13), %s686_s8, 16, %s149_s16, %s139_s17  }
  0x47   : > { %p778_p7 = scmp.ne.s32.totalorder %s777_s29, 0 }
  0x48   : > { %s711_s6 = sand.u32 (!%p778_p7), 1, %s542_s10   ;;  %p779_p1 = scmp.ne.s32.totalorder (!%p778_p7), %s773_s20, 0 }
  0x49   : > { %157 = sbr.rel (%p778_p7) target bundleno = 244 (0xf4), region = 28  ;;  %s365_s7 = sshll.u32 (!%p778_p7), %s711_s6, 5 }
  0x4a   : > { %s160_s14 = scalar_lea.sflag (!%p778_p7), [#allocation3], %s711_s6  ;;  %s163_s28 = scalar_lea.vmem (!%p778_p7), [#allocation2], %s365_s7 }
  0x4e   : > { %525 = dma.done.wait (%p779_p1), %s160_s14, 512  }
  0x4f   : > { %527 = vsyncadd (%p779_p1), %s160_s14, 4294966784  ;;  %s169_s3 = scalar_lea.sflag [#allocation6], %s711_s6  ;;  %s171_s29 = scalar_lea.vmem [#allocation5], %s711_s6 }
  0x50   : > { %529 = dma.done.wait (%p779_p1), %s169_s3, 16  }
  0x51   : > { %531 = vsyncadd (%p779_p1), %s169_s3, 4294967280  ;;  %vm200_vm0 = vcmask 130048   ;;  %v196_v0 = vld [vmem:[%s163_s28] sm:$0xff]  ;;  %v198_v1 = vld [vmem:[%s163_s28 + $0x10] sm:$0xff]  ;;  %v216_v8 = vlaneseq  ;;  %v556_v15 = vmov 0   ;;  %s366_s20 = sshll.u32 %s711_s6, 2 }
  0x52   : > { %v197_v2 = vld [vmem:[%s163_s28 + $0x8] sm:$0xff]  ;;  %v201_v3 = vsel %vm200_vm0, %v196_v0, -inf  ;;  %v207_v4 = vsel %vm200_vm0, %v198_v1, -inf  ;;  %v199_v5 = vld [vmem:[%s163_s28 + $0x18] sm:$0xff]  ;;  %v213_v9 = vld [vmem:[%s171_s29] sm:$0x1] }
  0x53   : > { %202 = vmax.xlane.f32.xlu0 %v201_v3  ;;  %208 = vmax.xlane.f32.xlu1 %v207_v4  ;;  %v204_v6 = vsel %vm200_vm0, %v197_v2, -inf  ;;  %v210_v7 = vsel %vm200_vm0, %v199_v5, -inf  ;;  %v217_v10 = vshrl.u32 %v216_v8, 7  ;;  %v226_v11 = vand.u32 127, %v216_v8  ;;  %s368_s8 = sshll.u32 %s594_s13, 6  ;;  %s195_s16 = scalar_lea.vmem [#allocation7], %s366_s20 }
  0x54   : > { %vm214_vm1 = vcmp.gt.f32.partialorder %v213_v9, 0.0  ;;  %vm243_vm2 = vcmask 1041409   ;;  %vm245_vm3 = vcmask 1042434   ;;  %vm247_vm4 = vcmask 1043459   ;;  %s267_s17 = sshll.u32 %s195_s16, 4  ;;  %s730_s19 = scalar_lea.hbm %s769_s2, %s368_s8  ;;  %s268_s17 = int_to_ptr.vmem [resolvable:$true] %s267_s17 }
  0x55   : > { %v218_v12 = vsub.s32 0, %v217_v10  ;;  %v215_v16 = vsel %vm214_vm1, 1, %v556_v15  ;;  %v229_v17 = vsub.s32 %v226_v11, %v217_v10  ;;  %vm251_vm6 = vcmask 60416   ;;  %s254_s24 = scalar_lea.sflag [#allocation4], %s711_s6  ;;  %s482_s25 = scalar_lea.vmem %s268_s17, 64 }
  0x56   : > { %p483_p6 = scmp.ne.s32.totalorder %s268_s17, %s482_s25  ;;  %p780_p13 = scmp.ne.s32.totalorder %s774_s21, 0 }
  0x57   : > { %205 = vmax.xlane.f32.xlu0 %v204_v6  ;;  %211 = vmax.xlane.f32.xlu1 %v210_v7  ;;  %v219_v18 = vrot.slane %v215_v16, %v218_v12  ;;  %s557_s13 = smov [#allocation7]  }
  0x58   : > { %p484_p9 = pnand %p483_p6, %p780_p13  ;;  %s486_s26 = sshll.u32 %s557_s13, 4  ;;  %s487_s26 = int_to_ptr.vmem [resolvable:$false] %s486_s26 }
  0x59   : > { %vm220_vm5 = vcmp.eq.s32.totalorder %v219_v18, 1  ;;  %s488_s23 = scalar_lea.vmem %s487_s26, 128  ;;  %p489_p10 = scmp.lt.s32.totalorder %s268_s17, %s487_s26 }
  0x5a   : > { %p485_p8 = pneg %p484_p9  ;;  %p490_p0 = scmp.lt.s32.totalorder %s488_s23, %s482_s25 }
  0x5c   : > { %p491_p2 = por %p490_p0, %p489_p10 }
  0x5e   : > { %p492_p4 = pnand %p491_p2, %p485_p8 }
  0xdc   : > { %v203_v13 = vpop.xlane.xlu0 %202  ;;  %v209_v14 = vpop.xlane.xlu1 %208 }
  0xdd   : > { %v230_v21 = vrot.slane %v203_v13, %v229_v17  ;;  %v238_v24 = vrot.slane %v209_v14, %v229_v17 }
  0xe0   : > { %v206_v19 = vpop.xlane.xlu0 %205  ;;  %v212_v20 = vpop.xlane.xlu1 %211 }
  0xe1   : > { %v234_v22 = vrot.slane %v206_v19, %v229_v17  ;;  %v242_v23 = vrot.slane %v212_v20, %v229_v17 }
  0xe3   : > { %v244_v25 = vsel %vm243_vm2, %v234_v22, %v230_v21 }
  0xe4   : > { %v246_v26 = vsel %vm245_vm3, %v238_v24, %v244_v25 }
  0xe5   : > { %v248_v27 = vsel %vm247_vm4, %v242_v23, %v246_v26 }
  0xe6   : > { %v250_v28 = vsel %vm220_vm5, %v248_v27, 0.0 }
  0xe7   : > { %252 = vst.msk [vmem:[%s195_s16] sm:$0xf] %vm251_vm6, %v250_v28 }
  0xe8   : > { %495 = shalt.err (!%p492_p4)
}
  0xe9   : > { %s496_s27 = scalar_lea.hbm %s730_s19, 64  ;;  %s500_s7 = scalar_lea.hbm %s769_s2, 128 }
  0xea   : > { %p497_p3 = scmp.ne.s32.totalorder %s730_s19, %s496_s27  ;;  %p501_p12 = scmp.lt.s32.totalorder %s730_s19, %s769_s2 }
  0xeb   : > { %p502_p7 = scmp.lt.s32.totalorder %s500_s7, %s496_s27 }
  0xec   : > { %p498_p5 = pnand %p497_p3, %p780_p13 }
  0xed   : > { %p503_p1 = por %p502_p7, %p501_p12 }
  0xee   : > { %p499_p11 = pneg %p498_p5 }
  0xf0   : > { %p504_p6 = pnand %p503_p1, %p499_p11 }
  0xf2   : > { %507 = shalt.err (!%p504_p6)
}
  0xf3   : > { %376 = dma.vmem_to_hbm [thread:$0]  (%p780_p13), %s268_s17, 64, %s730_s19, %s254_s24  }
  0xf4 PF: > { %s279_s3 = sand.u32 1, %s538_s9   ;;  %p781_p9 = scmp.ne.s32.totalorder %s775_s22, 0 }
  0xf5   : > { %p782_p8 = scmp.ge.s32.totalorder %s550_s12, 2  ;;  %s280_s29 = scalar_lea.sflag [#allocation4], %s279_s3 }
  0xf7   : > { %p386_p10 = pnand %p782_p8, %p781_p9 }
  0xf9   : > { %p387_p0 = pneg %p386_p10 }
  0xfb   : > { %533 = dma.done.wait (%p387_p0), %s280_s29, 64  }
  0xfc   : > { %535 = vsyncadd (%p387_p0), %s280_s29, 4294967232  ;;  %p18_p2 = scmp.ge.s32.totalorder %s598_s15, 4   ;;  %s783_s9 = smov %s542_s10 }
  0xfd   : > { %s784_s10 = smov %s546_s11  ;;  %s785_s11 = smov %s610_s18 }
  0xfe   : > { %s786_s12 = smov %s598_s15  ;;  %20 = sbr.rel (!%p18_p2) target bundleno = 7 (0x7), region = 86 }
 0x103   :  { %285 = vsyncpa [#allocation3], 1 }
 0x104   :  { %287 = vsyncpa [#allocation3 + $0x1], 1 }
 0x105   :  { %288 = vsyncpa [#allocation6], 1 }
 0x106   :  { %290 = vsyncpa [#allocation6 + $0x1], 1 }
 0x107   :  { %291 = vsyncpa [#allocation4], 1 }
 0x108   :  { %293 = vsyncpa [#allocation4 + $0x1], 1 }

</bundles_post_ra>
